<compile_context>
chip_gen: v6e
topology: v6e:2x2x1
jax: 0.10.0
libtpu: 0.0.40
codegen_flags: <defaults>
</compile_context>

<pallas_src>
import functools

import jax
import jax.numpy as jnp
from jax.experimental import pallas as pl
from jax.experimental.pallas import tpu as pltpu


# ------------------------------ conv + stats kernel -------------------------

def _conv_stats_kernel(xr_ref, wg_ref, o_ref, stats_ref, *, th, ow):
    """One output tile: conv (2 accumulated MXU matmuls) + per-tile BN stats.

    xr_ref   : (1, OH+1, OW, 8*Cin)   rx-folded / stride-2 space-to-depth input
    wg_ref   : (2, 8*Cin, 128)        weights regrouped by ry, padded Cout
    o_ref    : (1, th, OW, 128)       conv output tile (f32)
    stats_ref: (1, 1, 8, 128)         row 0 = per-channel sum, row 1 = sum sq
    """
    t = pl.program_id(1)
    oh0 = t * th
    kdim = xr_ref.shape[-1]
    cpad = o_ref.shape[-1]
    rows = th * ow

    def tap(ry):
        # Slice only the leading (row) dim -> no sublane shuffle / VMEM copy.
        patch = xr_ref[0, pl.ds(oh0 + ry, th), :, :]            # (th, ow, kdim)
        return jnp.dot(patch.reshape(rows, kdim), wg_ref[ry],
                       preferred_element_type=jnp.float32)       # (rows, cpad)

    acc = tap(0) + tap(1)                                        # f32 accumulate

    # Contiguous, unmasked full-block store (OW % 8 == 0, cpad == 128).
    o_ref[0] = acc.reshape(th, ow, cpad)

    # Per-tile BN partial statistics (reduced later in the wrapper).
    s = jnp.sum(acc, axis=0, keepdims=True)                      # (1, cpad)
    ss = jnp.sum(acc * acc, axis=0, keepdims=True)               # (1, cpad)
    rows8 = jax.lax.broadcasted_iota(jnp.int32, (8, cpad), 0)
    stats_ref[0, 0] = jnp.where(rows8 == 0, s,
                                jnp.where(rows8 == 1, ss, 0.0))


# -------------------------------- wrapper -----------------------------------

def _pick_row_tile(oh, ow, target_rows):
    """Largest divisor of OH whose tile (th*OW rows) stays near target_rows."""
    th = max(1, min(oh, max(1, target_rows // max(ow, 1))))
    while oh % th:
        th -= 1
    return th


def forward(x17, x13, weight, gamma, beta, *, eps=1e-3,
            row_tile_target=4096, matmul_dtype=jnp.bfloat16):
    n, cin, h, w = x17.shape
    cout = weight.shape[0]
    assert weight.shape == (cout, cin, 3, 3)
    assert h % 2 == 0 and w % 2 == 0, "stride-2 parity decomposition needs even H, W"
    oh, ow = h // 2, w // 2
    assert ow % 8 == 0, "OW must be a multiple of 8 for aligned tiles"
    cpad = 128                       # pad Cout 96 -> 128 for lane-dense stores
    kdim = 8 * cin                   # (rx, py, px) folded into channels
    m = n * oh * ow

    # --- XLA-side prep: add + NHWC + pad + strided-slice space-to-depth ------
    # xr[n, i, j, ((rx*2 + py)*2 + px)*cin + c] = xpad[n, 2*(i) + py, 2*(j+rx) + px, c]
    x18 = x17 + x13                                         # fold the add here
    xh = jnp.transpose(x18, (0, 2, 3, 1))                   # NHWC
    xp = jnp.pad(xh, ((0, 0), (1, 1), (1, 1), (0, 0)))      # spatial pad = 1
    parts = []
    for rx in (0, 1):
        for py in (0, 1):
            for px in (0, 1):
                q = 2 * rx + px
                parts.append(xp[:, py:py + 2 * oh + 1:2, q:q + 2 * ow - 1:2, :])
    xr = jnp.concatenate(parts, axis=-1).astype(matmul_dtype)   # (n, oh+1, ow, kdim)

    # Weights regrouped by ry = dy // 2 into 2 blocks of shape (8*cin, cpad).
    # Taps outside the 3x3 window and padded output channels stay zero.
    wg = jnp.zeros((2, kdim, cpad), jnp.float32)
    for ry in (0, 1):
        for rx in (0, 1):
            for py in (0, 1):
                for px in (0, 1):
                    dy, dx = 2 * ry + py, 2 * rx + px
                    if dy < 3 and dx < 3:
                        base = (rx * 4 + py * 2 + px) * cin
                        wg = wg.at[ry, base:base + cin, :cout].set(
                            weight[:, :, dy, dx].T)
    wg = wg.astype(matmul_dtype)

    th = _pick_row_tile(oh, ow, row_tile_target)   # default: th = oh (1 tile/img)
    grid_t = oh // th
    grid = (n, grid_t)

    kernel = functools.partial(_conv_stats_kernel, th=th, ow=ow)

    conv, stats = pl.pallas_call(
        kernel,
        out_shape=(jax.ShapeDtypeStruct((n, oh, ow, cpad), jnp.float32),
                   jax.ShapeDtypeStruct((n, grid_t, 8, cpad), jnp.float32)),
        grid_spec=pltpu.PrefetchScalarGridSpec(
            num_scalar_prefetch=0,
            grid=grid,
            in_specs=[
                # Full rx-folded image per batch element; block index only
                # changes with n so it is DMA'd once per image.
                pl.BlockSpec((1, oh + 1, ow, kdim),
                             lambda bn, bt: (bn, 0, 0, 0)),
                pl.BlockSpec((2, kdim, cpad), lambda bn, bt: (0, 0, 0)),
            ],
            out_specs=(
                # Per-tile writeback: VMEM footprint is flat in batch size.
                pl.BlockSpec((1, th, ow, cpad), lambda bn, bt: (bn, bt, 0, 0)),
                pl.BlockSpec((1, 1, 8, cpad), lambda bn, bt: (bn, bt, 0, 0)),
            ),
        ),
        compiler_params=pltpu.CompilerParams(
            # Every grid step writes disjoint output/stat blocks -> megacore OK.
            dimension_semantics=("parallel", "parallel")),
    )(xr, wg)

    # --- BN reduce + apply (XLA; fuses with channel slice + NCHW transpose) --
    s = jnp.sum(stats[:, :, 0, :cout], axis=(0, 1))
    ss = jnp.sum(stats[:, :, 1, :cout], axis=(0, 1))
    mean = s / m
    var = ss / m - mean * mean                       # biased (PyTorch normalize)
    scale = gamma * jax.lax.rsqrt(var + eps)
    shift = beta - mean * scale
    y = conv[..., :cout] * scale + shift             # (n, oh, ow, cout)
    return jnp.transpose(y, (0, 3, 1, 2))            # NCHW


# ------------------------------ reference -----------------------------------

def _reference(x17, x13, weight, gamma, beta, eps=1e-3):
    x18 = x17 + x13
    y = jax.lax.conv_general_dilated(
        x18, weight, window_strides=(2, 2), padding=((1, 1), (1, 1)),
        dimension_numbers=("NCHW", "OIHW", "NCHW"),
        precision=jax.lax.Precision.HIGHEST)
    mean = y.mean(axis=(0, 2, 3), keepdims=True)
    var = ((y - mean) ** 2).mean(axis=(0, 2, 3), keepdims=True)
    return ((y - mean) * jax.lax.rsqrt(var + eps)
            * gamma.reshape(1, -1, 1, 1) + beta.reshape(1, -1, 1, 1))


# --------------------------------- main --------------------------------------

if __name__ == "__main__":
    key = jax.random.PRNGKey(0)
    k1, k2, k3, k4, k5 = jax.random.split(key, 5)

    # Small shapes consistent with the module: channels fixed by the conv
    # (24 -> 96), spatial shrunk from 112 -> 16.
    N, C_IN, H, W = 1, 24, 16, 16
    C_OUT, KH, KW = 96, 3, 3

    x17 = jax.random.normal(k1, (N, C_IN, H, W), dtype=jnp.float32)
    x13 = jax.random.normal(k2, (N, C_IN, H, W), dtype=jnp.float32)

    fan_in = C_IN * KH * KW
    weight = jax.random.normal(k3, (C_OUT, C_IN, KH, KW),
                               dtype=jnp.float32) * (2.0 / fan_in) ** 0.5
    gamma = 1.0 + 0.1 * jax.random.normal(k4, (C_OUT,), dtype=jnp.float32)
    beta = 0.1 * jax.random.normal(k5, (C_OUT,), dtype=jnp.float32)

    ref = _reference(x17, x13, weight, gamma, beta)

    # 1) f32-operand path (tight tolerance; validates the kernel structure).
    fwd_f32 = jax.jit(functools.partial(forward, row_tile_target=32,
                                        matmul_dtype=jnp.float32))
    out_f32 = fwd_f32(x17, x13, weight, gamma, beta)
    jax.block_until_ready(out_f32)
    assert out_f32.shape == (N, C_OUT, H // 2, W // 2)
    err_f32 = float(jnp.max(jnp.abs(out_f32 - ref)))
    assert err_f32 < 5e-3, f"f32 path max abs err vs reference: {err_f32}"

    # 2) bf16-operand path (production setting; f32 accumulation). 216-term
    #    dot products with bf16-rounded operands give ~1e-2 worst-case error;
    #    a structural bug would be O(1).
    fwd_bf16 = jax.jit(functools.partial(forward, row_tile_target=32,
                                         matmul_dtype=jnp.bfloat16))
    out_bf16 = fwd_bf16(x17, x13, weight, gamma, beta)
    jax.block_until_ready(out_bf16)
    assert out_bf16.shape == (N, C_OUT, H // 2, W // 2)
    err_bf16 = float(jnp.max(jnp.abs(out_bf16 - ref)))
    assert err_bf16 < 2e-2, f"bf16 path max abs err vs reference: {err_bf16}"

    print("KERNEL_OK")
</pallas_src>

<mosaic_0001>
module attributes {stable_mosaic.version = 11 : i64} {
  func.func @_conv_stats_kernel(%arg0: i32, %arg1: i32, %arg2: memref<1x9x8x192xf32, #tpu.memory_space<vmem>>, %arg3: memref<2x192x128xf32, #tpu.memory_space<vmem>>, %arg4: memref<1x4x8x128xf32, #tpu.memory_space<vmem>>, %arg5: memref<1x1x8x128xf32, #tpu.memory_space<vmem>>) attributes {dimension_semantics = [#tpu.dimension_semantics<parallel>, #tpu.dimension_semantics<parallel>], iteration_bounds = array<i64: 1, 2>, scalar_prefetch = 0 : i64, scratch_operands = 0 : i64, tpu.core_type = #tpu.core_type<tc>, window_params = [{transform_indices = @transform_0, window_bounds = array<i64: 1, 9, 8, 192>}, {pipeline_mode = #tpu.pipeline_mode<synchronous>, transform_indices = @transform_1, window_bounds = array<i64: 2, 192, 128>}, {transform_indices = @transform_2, window_bounds = array<i64: 1, 4, 8, 128>}, {transform_indices = @transform_3, window_bounds = array<i64: 1, 1, 8, 128>}]} {
    %c4_i32 = arith.constant 4 : i32
    %0 = arith.muli %arg1, %c4_i32 : i32
    %c0_i32 = arith.constant 0 : i32
    %1 = arith.addi %0, %c0_i32 : i32
    %c0 = arith.constant 0 : index
    %2 = arith.index_cast %1 : i32 to index
    %c0_0 = arith.constant 0 : index
    %c0_1 = arith.constant 0 : index
    %3 = vector.load %arg2[%c0, %2, %c0_0, %c0_1] : memref<1x9x8x192xf32, #tpu.memory_space<vmem>>, vector<1x4x8x192xf32>
    %4 = vector.shape_cast %3 : vector<1x4x8x192xf32> to vector<4x8x192xf32>
    %5 = vector.shape_cast %4 : vector<4x8x192xf32> to vector<32x192xf32>
    %c0_2 = arith.constant 0 : index
    %c0_3 = arith.constant 0 : index
    %c0_4 = arith.constant 0 : index
    %6 = vector.load %arg3[%c0_2, %c0_3, %c0_4] : memref<2x192x128xf32, #tpu.memory_space<vmem>>, vector<1x192x128xf32>
    %7 = vector.shape_cast %6 : vector<1x192x128xf32> to vector<192x128xf32>
    %cst = arith.constant dense<0.000000e+00> : vector<32x128xf32>
    %8 = tpu.matmul %5, %7, %cst {dimension_numbers = #tpu.dot_dimension_numbers<[1], [0], [0], [1], [0, 0, 1, 1], [], []>} : vector<32x192xf32>, vector<192x128xf32>, vector<32x128xf32> -> vector<32x128xf32>
    %c1_i32 = arith.constant 1 : i32
    %9 = arith.addi %0, %c1_i32 : i32
    %c0_5 = arith.constant 0 : index
    %10 = arith.index_cast %9 : i32 to index
    %c0_6 = arith.constant 0 : index
    %c0_7 = arith.constant 0 : index
    %11 = vector.load %arg2[%c0_5, %10, %c0_6, %c0_7] : memref<1x9x8x192xf32, #tpu.memory_space<vmem>>, vector<1x4x8x192xf32>
    %12 = vector.shape_cast %11 : vector<1x4x8x192xf32> to vector<4x8x192xf32>
    %13 = vector.shape_cast %12 : vector<4x8x192xf32> to vector<32x192xf32>
    %c1 = arith.constant 1 : index
    %c0_8 = arith.constant 0 : index
    %c0_9 = arith.constant 0 : index
    %14 = vector.load %arg3[%c1, %c0_8, %c0_9] : memref<2x192x128xf32, #tpu.memory_space<vmem>>, vector<1x192x128xf32>
    %15 = vector.shape_cast %14 : vector<1x192x128xf32> to vector<192x128xf32>
    %cst_10 = arith.constant dense<0.000000e+00> : vector<32x128xf32>
    %16 = tpu.matmul %13, %15, %cst_10 {dimension_numbers = #tpu.dot_dimension_numbers<[1], [0], [0], [1], [0, 0, 1, 1], [], []>} : vector<32x192xf32>, vector<192x128xf32>, vector<32x128xf32> -> vector<32x128xf32>
    %17 = arith.addf %8, %16 : vector<32x128xf32>
    %18 = vector.shape_cast %17 : vector<32x128xf32> to vector<4x8x128xf32>
    %c0_11 = arith.constant 0 : index
    %c0_12 = arith.constant 0 : index
    %c0_13 = arith.constant 0 : index
    %c0_14 = arith.constant 0 : index
    %19 = vector.load %arg4[%c0_11, %c0_12, %c0_13, %c0_14] : memref<1x4x8x128xf32, #tpu.memory_space<vmem>>, vector<1x4x8x128xf32>
    %20 = vector.shape_cast %19 : vector<1x4x8x128xf32> to vector<4x8x128xf32>
    %21 = vector.shape_cast %18 : vector<4x8x128xf32> to vector<1x4x8x128xf32>
    tpu.vector_store %arg4[%c0_11, %c0_12, %c0_13, %c0_14], %21 {strides = array<i32>} : memref<1x4x8x128xf32, #tpu.memory_space<vmem>>, vector<1x4x8x128xf32>,
    %cst_15 = arith.constant dense<0.000000e+00> : vector<128xf32>
    %22 = vector.multi_reduction <add>, %17, %cst_15 [0] : vector<32x128xf32> to vector<128xf32>
    %23 = vector.shape_cast %22 : vector<128xf32> to vector<1x128xf32>
    %24 = arith.mulf %17, %17 : vector<32x128xf32>
    %cst_16 = arith.constant dense<0.000000e+00> : vector<128xf32>
    %25 = vector.multi_reduction <add>, %24, %cst_16 [0] : vector<32x128xf32> to vector<128xf32>
    %26 = vector.shape_cast %25 : vector<128xf32> to vector<1x128xf32>
    %27 = tpu.iota {dimensions = array<i32: 0>} : vector<8x128xi32>
    %c0_i32_17 = arith.constant 0 : i32
    %28 = vector.broadcast %c0_i32_17 : i32 to vector<8x128xi32>
    %29 = arith.cmpi eq, %27, %28 : vector<8x128xi32>
    %c1_i32_18 = arith.constant 1 : i32
    %30 = vector.broadcast %c1_i32_18 : i32 to vector<8x128xi32>
    %31 = arith.cmpi eq, %27, %30 : vector<8x128xi32>
    %cst_19 = arith.constant 0.000000e+00 : f32
    %32 = vector.shape_cast %26 : vector<1x128xf32> to vector<1x128xf32>
    %33 = vector.broadcast %32 : vector<1x128xf32> to vector<8x128xf32>
    %34 = vector.broadcast %cst_19 : f32 to vector<8x128xf32>
    %35 = arith.select %31, %33, %34 : vector<8x128xi1>, vector<8x128xf32>
    %36 = vector.shape_cast %23 : vector<1x128xf32> to vector<1x128xf32>
    %37 = vector.broadcast %36 : vector<1x128xf32> to vector<8x128xf32>
    %38 = arith.select %29, %37, %35 : vector<8x128xi1>, vector<8x128xf32>
    %c0_20 = arith.constant 0 : index
    %c0_21 = arith.constant 0 : index
    %c0_22 = arith.constant 0 : index
    %c0_23 = arith.constant 0 : index
    %39 = vector.load %arg5[%c0_20, %c0_21, %c0_22, %c0_23] : memref<1x1x8x128xf32, #tpu.memory_space<vmem>>, vector<1x1x8x128xf32>
    %40 = vector.shape_cast %39 : vector<1x1x8x128xf32> to vector<8x128xf32>
    %41 = vector.shape_cast %38 : vector<8x128xf32> to vector<1x1x8x128xf32>
    tpu.vector_store %arg5[%c0_20, %c0_21, %c0_22, %c0_23], %41 {strides = array<i32>} : memref<1x1x8x128xf32, #tpu.memory_space<vmem>>, vector<1x1x8x128xf32>,
    return
  }
  func.func @transform_0(%arg0: i32, %arg1: i32) -> (i32, i32, i32, i32) {
    %c0_i32 = arith.constant 0 : i32
    %c0_i32_0 = arith.constant 0 : i32
    %c0_i32_1 = arith.constant 0 : i32
    %c0_i32_2 = arith.constant 0 : i32
    return %arg0, %c0_i32, %c0_i32_0, %c0_i32_1 : i32, i32, i32, i32
  }
  func.func @transform_1(%arg0: i32, %arg1: i32) -> (i32, i32, i32) {
    %c0_i32 = arith.constant 0 : i32
    %c0_i32_0 = arith.constant 0 : i32
    %c0_i32_1 = arith.constant 0 : i32
    %c0_i32_2 = arith.constant 0 : i32
    return %c0_i32, %c0_i32_0, %c0_i32_1 : i32, i32, i32
  }
  func.func @transform_2(%arg0: i32, %arg1: i32) -> (i32, i32, i32, i32) {
    %c0_i32 = arith.constant 0 : i32
    %c0_i32_0 = arith.constant 0 : i32
    %c0_i32_1 = arith.constant 0 : i32
    return %arg0, %arg1, %c0_i32, %c0_i32_0 : i32, i32, i32, i32
  }
  func.func @transform_3(%arg0: i32, %arg1: i32) -> (i32, i32, i32, i32) {
    %c0_i32 = arith.constant 0 : i32
    %c0_i32_0 = arith.constant 0 : i32
    %c0_i32_1 = arith.constant 0 : i32
    return %arg0, %arg1, %c0_i32, %c0_i32_0 : i32, i32, i32, i32
  }
}

</mosaic_0001>

<bundles_post_ra>
// kernel: forward.1
= control target key start
LH: loop header
LB: loop body
LE: loop exit
PB: predicated region body
PF: predicated region fallthrough
CT: control target
= control target key end

     0   :  { %s781_s12 = smov 0   ;;  %s783_s13 = smov 0   ;;  %s1035_s0 = inlined_call_operand.vmem [shape: f32[1,9,8,192], index: 0, kind: input, shape index: {}]   ;;  %s1036_s1 = inlined_call_operand.vmem [shape: f32[2,192,128], index: 1, kind: input, shape index: {}]   ;;  %s1037_s2 = inlined_call_operand.vmem [shape: f32[1,8,8,128], index: 2, kind: output, shape index: {0}]   ;;  %s1038_s3 = inlined_call_operand.vmem [shape: f32[1,2,8,128], index: 3, kind: output, shape index: {1}]  }
   0x1   :  { %s785_s14 = smov 0  }
   0x2 LB: > { %s23_s15 = sadd.s32 1, %s754_s13  ;;  %p657_p0 = scmp.ge.s32.totalorder %s758_s14, 1  ;;  %s758_s14 = sphi %s785_s14, %s14_s14   ;;  %s754_s13 = sphi %s783_s13, %s1040_s13   ;;  %s750_s12 = sphi %s781_s12, %s1039_s12  }
   0x3   : > { %p24_p1 = scmp.ge.s32.totalorder %s23_s15, 2  ;;  %p156_p2 = scmp.lt.s32.totalorder %s758_s14, 3 }
   0x5   : > { %s1042_s15 = smov (%p24_p1, %s23_s15), 0  ;;  %p157_p3 = pnand %p657_p0, %p156_p2 }
   0x6   : > { %s709_s4 = sshll.u32 (!%p157_p3), %s750_s12, 6  ;;  %s658_s24 = sshll.u32 (!%p157_p3), %s750_s12, 2 }
   0x7   : > { %160 = sbr.rel (%p157_p3) target bundleno = 288 (0x120), region = 28  ;;  %s979_s11 = scalar_lea.vmem (!%p157_p3), %s1035_s0, %s709_s4 }
   0x8   : > { %p200_p4 = scmp.lt.s32.totalorder (!%p157_p3), %s658_s24, 7  ;;  %p209_p5 = scmp.lt.s32.totalorder (!%p157_p3), %s750_s12, 1 }
   0xc   : > { %v689_v0 = vld [vmem:[%s1036_s1 + $0x138] sm:$0xff]  ;;  %v760_v2 = vmov 0.0   ;;  %v688_v3 = vld [vmem:[%s1036_s1 + $0x130] sm:$0xff]  ;;  %v687_v5 = vld [vmem:[%s1036_s1 + $0x128] sm:$0xff]  ;;  %vm288_vm0 = vcmask 523264   ;;  %s1044_s24 = smov (!%p200_p4, %s658_s24), 7 }
   0xd   : > { %v242_v1 = vld [vmem:[%s1036_s1 + $0x78] sm:$0xff]  ;;  %301 = vmatprep.subr.mxu0 %v760_v2  ;;  %398 = vmatprep.subr.mxu1 %v760_v2  ;;  %v241_v4 = vld [vmem:[%s1036_s1 + $0x70] sm:$0xff]  ;;  %v240_v6 = vld [vmem:[%s1036_s1 + $0x68] sm:$0xff]  ;;  %s659_s25 = sshll.u32 %s1044_s24, 3  ;;  %s1046_s12 = smov (!%p209_p5, %s750_s12), 1 }
   0xe   : > { %302 = vmatpush1.msra.mxu0 %v689_v0  ;;  %399 = vmatpush1.msra.mxu1 %v242_v1  ;;  %v686_v7 = vld [vmem:[%s1036_s1 + $0x120] sm:$0xff]  ;;  %v685_v9 = vld [vmem:[%s1036_s1 + $0x118] sm:$0xff]  ;;  %v684_v11 = vld [vmem:[%s1036_s1 + $0x110] sm:$0xff]  ;;  %s205_s28 = scalar_lea.vmem %s1037_s2, %s659_s25  ;;  %s660_s29 = sshll.u32 %s1046_s12, 3 }
   0xf   : > { %303 = vmatprep.subr.mxu0 %v760_v2  ;;  %400 = vmatprep.subr.mxu1 %v760_v2  ;;  %v239_v8 = vld [vmem:[%s1036_s1 + $0x60] sm:$0xff]  ;;  %v238_v10 = vld [vmem:[%s1036_s1 + $0x58] sm:$0xff]  ;;  %v237_v12 = vld [vmem:[%s1036_s1 + $0x50] sm:$0xff]  ;;  %s214_s5 = scalar_lea.vmem %s1038_s3, %s660_s29 }
  0x10   : > { %304 = vmatpush1.msra.mxu0 %v688_v3  ;;  %401 = vmatpush1.msra.mxu1 %v241_v4  ;;  %v683_v13 = vld [vmem:[%s1036_s1 + $0x108] sm:$0xff]  ;;  %v682_v15 = vld [vmem:[%s1036_s1 + $0x100] sm:$0xff]  ;;  %v681_v17 = vld [vmem:[%s1036_s1 + $0xf8] sm:$0xff] }
  0x11   : > { %305 = vmatprep.subr.mxu0 %v760_v2  ;;  %402 = vmatprep.subr.mxu1 %v760_v2  ;;  %v236_v14 = vld [vmem:[%s1036_s1 + $0x48] sm:$0xff]  ;;  %v235_v16 = vld [vmem:[%s1036_s1 + $0x40] sm:$0xff]  ;;  %v234_v18 = vld [vmem:[%s1036_s1 + $0x38] sm:$0xff] }
  0x12   : > { %306 = vmatpush1.msra.mxu0 %v687_v5  ;;  %403 = vmatpush1.msra.mxu1 %v240_v6  ;;  %v680_v19 = vld [vmem:[%s1036_s1 + $0xf0] sm:$0xff]  ;;  %v679_v21 = vld [vmem:[%s1036_s1 + $0xe8] sm:$0xff]  ;;  %v678_v23 = vld [vmem:[%s1036_s1 + $0xe0] sm:$0xff] }
  0x13   : > { %307 = vmatprep.subr.mxu0 %v760_v2  ;;  %404 = vmatprep.subr.mxu1 %v760_v2  ;;  %v233_v20 = vld [vmem:[%s1036_s1 + $0x30] sm:$0xff]  ;;  %v232_v22 = vld [vmem:[%s1036_s1 + $0x28] sm:$0xff]  ;;  %v231_v24 = vld [vmem:[%s1036_s1 + $0x20] sm:$0xff] }
  0x14   : > { %308 = vmatpush1.msra.mxu0 %v686_v7  ;;  %405 = vmatpush1.msra.mxu1 %v239_v8  ;;  %v677_v25 = vld [vmem:[%s1036_s1 + $0xd8] sm:$0xff]  ;;  %v676_v27 = vld [vmem:[%s1036_s1 + $0xd0] sm:$0xff]  ;;  %v675_v29 = vld [vmem:[%s1036_s1 + $0xc8] sm:$0xff] }
  0x15   : > { %309 = vmatprep.subr.mxu0 %v760_v2  ;;  %406 = vmatprep.subr.mxu1 %v760_v2  ;;  %v230_v26 = vld [vmem:[%s1036_s1 + $0x18] sm:$0xff]  ;;  %v229_v28 = vld [vmem:[%s1036_s1 + $0x10] sm:$0xff]  ;;  %v228_v30 = vld [vmem:[%s1036_s1 + $0x8] sm:$0xff] }
  0x16   : > { %310 = vmatpush1.msra.mxu0 %v685_v9  ;;  %407 = vmatpush1.msra.mxu1 %v238_v10  ;;  %v674_v31 = vld [vmem:[%s1036_s1 + $0xc0] sm:$0xff]  ;;  %v697_v33 = vld [vmem:[%s1036_s1 + $0x178] sm:$0xff]  ;;  %v696_v35 = vld [vmem:[%s1036_s1 + $0x170] sm:$0xff] }
  0x17   : > { %311 = vmatprep.subr.mxu0 %v760_v2  ;;  %408 = vmatprep.subr.mxu1 %v760_v2  ;;  %v227_v32 = vld [vmem:[%s1036_s1] sm:$0xff]  ;;  %v250_v34 = vld [vmem:[%s1036_s1 + $0xb8] sm:$0xff]  ;;  %v249_v36 = vld [vmem:[%s1036_s1 + $0xb0] sm:$0xff] }
  0x18   : > { %312 = vmatpush1.msra.mxu0 %v684_v11  ;;  %409 = vmatpush1.msra.mxu1 %v237_v12  ;;  %v695_v37 = vld [vmem:[%s1036_s1 + $0x168] sm:$0xff]  ;;  %v694_v39 = vld [vmem:[%s1036_s1 + $0x160] sm:$0xff]  ;;  %v693_v41 = vld [vmem:[%s1036_s1 + $0x158] sm:$0xff] }
  0x19   : > { %313 = vmatprep.subr.mxu0 %v760_v2  ;;  %410 = vmatprep.subr.mxu1 %v760_v2  ;;  %v248_v38 = vld [vmem:[%s1036_s1 + $0xa8] sm:$0xff]  ;;  %v247_v40 = vld [vmem:[%s1036_s1 + $0xa0] sm:$0xff]  ;;  %v246_v42 = vld [vmem:[%s1036_s1 + $0x98] sm:$0xff] }
  0x1a   : > { %314 = vmatpush1.msra.mxu0 %v683_v13  ;;  %411 = vmatpush1.msra.mxu1 %v236_v14  ;;  %v692_v43 = vld [vmem:[%s1036_s1 + $0x150] sm:$0xff]  ;;  %v691_v45 = vld [vmem:[%s1036_s1 + $0x148] sm:$0xff]  ;;  %v690_v47 = vld [vmem:[%s1036_s1 + $0x140] sm:$0xff] }
  0x1b   : > { %315 = vmatprep.subr.mxu0 %v760_v2  ;;  %412 = vmatprep.subr.mxu1 %v760_v2  ;;  %v245_v44 = vld [vmem:[%s1036_s1 + $0x90] sm:$0xff]  ;;  %v244_v46 = vld [vmem:[%s1036_s1 + $0x88] sm:$0xff]  ;;  %v667_v48 = vld [vmem:[%s979_s11 + $0x18] sm:$0xff] }
  0x1c   : > { %316 = vmatpush1.msra.mxu0 %v682_v15  ;;  %413 = vmatpush1.msra.mxu1 %v235_v16  ;;  %v243_v49 = vld [vmem:[%s1036_s1 + $0x80] sm:$0xff]  ;;  %v220_v50 = vld [vmem:[%s979_s11 + $0x8] sm:$0xff]  ;;  %v666_v51 = vld [vmem:[%s979_s11 + $0x10] sm:$0xff] }
  0x1d   : > { %317 = vmatprep.subr.mxu0 %v760_v2  ;;  %414 = vmatprep.subr.mxu1 %v760_v2  ;;  %v219_v52 = vld [vmem:[%s979_s11] sm:$0xff]  ;;  %v669_v53 = vld [vmem:[%s979_s11 + $0x28] sm:$0xff]  ;;  %v671_v55 = vld [vmem:[%s979_s11 + $0x38] sm:$0xff] }
  0x1e   : > { %318 = vmatpush1.msra.mxu0 %v681_v17  ;;  %415 = vmatpush1.msra.mxu1 %v234_v18  ;;  %v668_v54 = vld [vmem:[%s979_s11 + $0x20] sm:$0xff]  ;;  %v670_v56 = vld [vmem:[%s979_s11 + $0x30] sm:$0xff]  ;;  %v673_v57 = vld [vmem:[%s979_s11 + $0x48] sm:$0xff] }
  0x1f   : > { %319 = vmatprep.subr.mxu0 %v760_v2  ;;  %416 = vmatprep.subr.mxu1 %v760_v2  ;;  %v672_v58 = vld [vmem:[%s979_s11 + $0x40] sm:$0xff] }
  0x20   : > { %320 = vmatpush1.msra.mxu0 %v680_v19  ;;  %417 = vmatpush1.msra.mxu1 %v233_v20 }
  0x21   : > { %321 = vmatprep.subr.mxu0 %v760_v2  ;;  %418 = vmatprep.subr.mxu1 %v760_v2 }
  0x22   : > { %322 = vmatpush1.msra.mxu0 %v679_v21  ;;  %419 = vmatpush1.msra.mxu1 %v232_v22 }
  0x23   : > { %323 = vmatprep.subr.mxu0 %v760_v2  ;;  %420 = vmatprep.subr.mxu1 %v760_v2 }
  0x24   : > { %324 = vmatpush1.msra.mxu0 %v678_v23  ;;  %421 = vmatpush1.msra.mxu1 %v231_v24 }
  0x25   : > { %325 = vmatprep.subr.mxu0 %v760_v2  ;;  %422 = vmatprep.subr.mxu1 %v760_v2 }
  0x26   : > { %326 = vmatpush1.msra.mxu0 %v677_v25  ;;  %423 = vmatpush1.msra.mxu1 %v230_v26 }
  0x27   : > { %327 = vmatprep.subr.mxu0 %v760_v2  ;;  %424 = vmatprep.subr.mxu1 %v760_v2 }
  0x28   : > { %328 = vmatpush1.msra.mxu0 %v676_v27  ;;  %425 = vmatpush1.msra.mxu1 %v229_v28  ;;  %v509_v28 = vlaneseq }
  0x29   : > { %329 = vmatprep.subr.mxu0 %v760_v2  ;;  %426 = vmatprep.subr.mxu1 %v760_v2 }
  0x2a   : > { %330 = vmatpush1.msra.mxu0 %v675_v29  ;;  %427 = vmatpush1.msra.mxu1 %v228_v30 }
  0x2b   : > { %331 = vmatprep.subr.mxu0 %v760_v2  ;;  %428 = vmatprep.subr.mxu1 %v760_v2 }
  0x2c   : > { %332 = vmatpush1.msra.mxu0 %v674_v31  ;;  %429 = vmatpush1.msra.mxu1 %v227_v32 }
  0x2d   : > { %349 = vmatprep.subr.mxu0 %v760_v2  ;;  %446 = vmatprep.subr.mxu1 %v760_v2 }
  0x2e   : > { %350 = vmatpush2.msra.mxu0 %v697_v33  ;;  %447 = vmatpush2.msra.mxu1 %v250_v34  ;;  %v510_v33 = vshrl.u32 %v509_v28, 7 }
  0x2f   : > { %351 = vmatprep.subr.mxu0 %v760_v2  ;;  %448 = vmatprep.subr.mxu1 %v760_v2 }
  0x30   : > { %352 = vmatpush2.msra.mxu0 %v696_v35  ;;  %449 = vmatpush2.msra.mxu1 %v249_v36  ;;  %vm512_vm1 = vcmp.eq.s32.totalorder %v510_v33, 1  ;;  %vm511_vm2 = vcmp.eq.s32.totalorder %v510_v33, 0 }
  0x31   : > { %353 = vmatprep.subr.mxu0 %v760_v2  ;;  %450 = vmatprep.subr.mxu1 %v760_v2 }
  0x32   : > { %354 = vmatpush2.msra.mxu0 %v695_v37  ;;  %451 = vmatpush2.msra.mxu1 %v248_v38 }
  0x33   : > { %355 = vmatprep.subr.mxu0 %v760_v2  ;;  %452 = vmatprep.subr.mxu1 %v760_v2 }
  0x34   : > { %356 = vmatpush2.msra.mxu0 %v694_v39  ;;  %453 = vmatpush2.msra.mxu1 %v247_v40 }
  0x35   : > { %357 = vmatprep.subr.mxu0 %v760_v2  ;;  %454 = vmatprep.subr.mxu1 %v760_v2 }
  0x36   : > { %358 = vmatpush2.msra.mxu0 %v693_v41  ;;  %455 = vmatpush2.msra.mxu1 %v246_v42 }
  0x37   : > { %359 = vmatprep.subr.mxu0 %v760_v2  ;;  %456 = vmatprep.subr.mxu1 %v760_v2 }
  0x38   : > { %360 = vmatpush2.msra.mxu0 %v692_v43  ;;  %457 = vmatpush2.msra.mxu1 %v245_v44 }
  0x39   : > { %361 = vmatprep.subr.mxu0 %v760_v2  ;;  %458 = vmatprep.subr.mxu1 %v760_v2 }
  0x3a   : > { %362 = vmatpush2.msra.mxu0 %v691_v45  ;;  %459 = vmatpush2.msra.mxu1 %v244_v46 }
  0x3b   : > { %363 = vmatprep.subr.mxu0 %v760_v2  ;;  %460 = vmatprep.subr.mxu1 %v760_v2 }
  0x3c   : > { %364 = vmatpush2.msra.mxu0 %v690_v47  ;;  %698 = vmatprep.mubr.msk.f32.mxu0 %vm288_vm0, %v667_v48 }
  0x3d   : > { %461 = vmatpush2.msra.mxu1 %v243_v49  ;;  %702 = vmatprep.mubr.msk.f32.mxu1 %vm288_vm0, %v220_v50 }
  0x3e   : > { %366 = vmatmul.mubr.f32.vlgmr.msra.gmra.mxu0 %v666_v51  ;;  %463 = vmatmul.mubr.f32.vlgmr.msra.gmra.mxu1 %v219_v52 }
  0x3f   : > { %699 = vmatprep.mubr.msk.f32.mxu0 %vm288_vm0, %v669_v53  ;;  %703 = vmatprep.mubr.msk.f32.mxu1 %vm288_vm0, %v667_v48 }
  0x42   : > { %371 = vmatmul.mubr.f32.gmra.mxu0 %v668_v54  ;;  %468 = vmatmul.mubr.f32.gmra.mxu1 %v666_v51 }
  0x43   : > { %700 = vmatprep.mubr.msk.f32.mxu0 %vm288_vm0, %v671_v55  ;;  %704 = vmatprep.mubr.msk.f32.mxu1 %vm288_vm0, %v669_v53 }
  0x46   : > { %376 = vmatmul.mubr.f32.gmra.mxu0 %v670_v56  ;;  %473 = vmatmul.mubr.f32.gmra.mxu1 %v668_v54 }
  0x47   : > { %701 = vmatprep.mubr.msk.f32.mxu0 %vm288_vm0, %v673_v57  ;;  %705 = vmatprep.mubr.msk.f32.mxu1 %vm288_vm0, %v671_v55 }
  0x4a   : > { %381 = vmatmul.mubr.f32.gmra.mxu0 %v672_v58  ;;  %478 = vmatmul.mubr.f32.gmra.mxu1 %v670_v56 }
  0xfe   : > { %v367_v59 = vpop.f32.mrf.mxu0  ;;  %v464_v60 = vpop.f32.mrf.mxu1 }
  0xff   : > { %v465_v61 = vadd.f32 %v464_v60, %v367_v59 }
 0x100   : > { %v369_v62 = vpop.f32.mrf.mxu0  ;;  %v466_v63 = vpop.f32.mrf.mxu1 }
 0x101   : > { %483 = vst [vmem:[%s205_s28] sm:$0xff] %v465_v61  ;;  %v496_v11 = vmul.f32 %v465_v61, %v465_v61 }
 0x102   : > { %v372_v0 = vpop.f32.mrf.mxu0  ;;  %v469_v1 = vpop.f32.mrf.mxu1 }
 0x103   : > { %v470_v2 = vadd.f32 %v469_v1, %v372_v0 }
 0x104   : > { %v374_v3 = vpop.f32.mrf.mxu0  ;;  %v471_v4 = vpop.f32.mrf.mxu1 }
 0x105   : > { %484 = vst [vmem:[%s205_s28 + $0x8] sm:$0xff] %v470_v2  ;;  %v497_v7 = vmul.f32 %v470_v2, %v470_v2  ;;  %v487_v12 = vadd.f32 %v470_v2, %v465_v61 }
 0x106   : > { %v377_v5 = vpop.f32.mrf.mxu0  ;;  %v474_v6 = vpop.f32.mrf.mxu1 }
 0x107   : > { %v475_v8 = vadd.f32 %v474_v6, %v377_v5  ;;  %v500_v16 = vadd.f32 %v497_v7, %v496_v11 }
 0x108   : > { %v379_v9 = vpop.f32.mrf.mxu0  ;;  %v476_v10 = vpop.f32.mrf.mxu1 }
 0x109   : > { %485 = vst [vmem:[%s205_s28 + $0x10] sm:$0xff] %v475_v8  ;;  %v498_v13 = vmul.f32 %v475_v8, %v475_v8  ;;  %v488_v17 = vadd.f32 %v487_v12, %v475_v8 }
 0x10a   : > { %v382_v14 = vpop.f32.mrf.mxu0  ;;  %v479_v15 = vpop.f32.mrf.mxu1 }
 0x10b   : > { %v480_v18 = vadd.f32 %v479_v15, %v382_v14  ;;  %v501_v21 = vadd.f32 %v500_v16, %v498_v13 }
 0x10c   : > { %v384_v19 = vpop.f32.mrf.mxu0  ;;  %v481_v20 = vpop.f32.mrf.mxu1 }
 0x10d   : > { %486 = vst [vmem:[%s205_s28 + $0x18] sm:$0xff] %v480_v18  ;;  %v489_v22 = vadd.f32 %v488_v17, %v480_v18  ;;  %v499_v23 = vmul.f32 %v480_v18, %v480_v18 }
 0x10f   : > { %v490_v24 = vrot.slane %v489_v22, 4  ;;  %v502_v25 = vadd.f32 %v501_v21, %v499_v23 }
 0x111   : > { %v491_v26 = vadd.f32 %v490_v24, %v489_v22  ;;  %v503_v27 = vrot.slane %v502_v25, 4 }
 0x113   : > { %v492_v29 = vrot.slane %v491_v26, 2  ;;  %v504_v30 = vadd.f32 %v503_v27, %v502_v25 }
 0x115   : > { %v493_v31 = vadd.f32 %v492_v29, %v491_v26  ;;  %v505_v32 = vrot.slane %v504_v30, 2 }
 0x117   : > { %v506_v34 = vadd.f32 %v505_v32, %v504_v30  ;;  %v494_v35 = vrot.slane %v493_v31, 1 }
 0x119   : > { %v507_v36 = vrot.slane %v506_v34, 1  ;;  %v495_v38 = vadd.f32 %v494_v35, %v493_v31 }
 0x11b   : > { %v508_v37 = vadd.f32 %v507_v36, %v506_v34 }
 0x11d   : > { %v513_v39 = vsel %vm512_vm1, %v508_v37, 0.0 }
 0x11e   : > { %v514_v40 = vsel %vm511_vm2, %v495_v38, %v513_v39 }
 0x11f   : > { %515 = vst [vmem:[%s214_s5] sm:$0xff] %v514_v40 }
 0x120 PF: > { %s14_s14 = sadd.s32 1, %s758_s14   ;;  %s1039_s12 = smov %s754_s13 }
 0x121   : > { %p11_p6 = scmp.ge.s32.totalorder %s14_s14, 4   ;;  %s1040_s13 = smov %s1042_s15 }
 0x123   :  { %13 = sbr.rel (!%p11_p6) target bundleno = 2 (0x2), region = 73 }

</bundles_post_ra>
